<compile_context>
chip_gen: v7x
topology: tpu7x:2x2x1
jax: 0.10.0
libtpu: 0.0.40
codegen_flags: <defaults>
</compile_context>

<pallas_src>
import jax
import jax.numpy as jnp
from jax.experimental import pallas as pl
from jax.experimental.pallas import tpu as pltpu

IN, H, OUT = 4, 512, 3
OUT_PAD = 128  # lane-dense padded output width


def _round_up(n, m):
    return ((n + m - 1) // m) * m


def mlp_kernel(x_ref, w1_ref, b1_ref, w2_ref, b2_ref, w3_ref, b3_ref, o_ref):
    # ---- Layer 1: Linear(4, 512) + ReLU on the VPU (K=4 is far too shallow
    # for an MXU pass). Runs in the dtype the wrapper chose: bf16 on v6e/v7x
    # (bf16 VALU), f32 on v5e.
    x = x_ref[...]                      # (tb, 4)
    w1 = w1_ref[...]                    # (4, 512)
    h1 = b1_ref[...]                    # (1, 512), broadcasts over rows
    h1 = h1 + x[:, 0:1] * w1[0:1, :]
    h1 = h1 + x[:, 1:2] * w1[1:2, :]
    h1 = h1 + x[:, 2:3] * w1[2:3, :]
    h1 = h1 + x[:, 3:4] * w1[3:4, :]
    h1 = jnp.maximum(h1, 0.0)           # (tb, 512)

    # ---- Layer 2: Linear(512, 512) + ReLU on the MXU, bf16 operands,
    # f32 accumulate. (astype is a no-op when layer 1 already ran in bf16.)
    h2 = jnp.dot(h1.astype(jnp.bfloat16), w2_ref[...],
                 preferred_element_type=jnp.float32)
    h2 = jnp.maximum(h2 + b2_ref[...], 0.0)  # (tb, 512) f32

    # ---- Layer 3: Linear(512, 3) padded to 128 output lanes so the store is
    # a full-width unmasked vst. bf16 operands, f32 accumulate, bf16 store.
    o = jnp.dot(h2.astype(jnp.bfloat16), w3_ref[...],
                preferred_element_type=jnp.float32)
    o_ref[...] = (o + b3_ref[...]).astype(o_ref.dtype)  # (tb, 128) bf16


def pp_forward(x, params, *, tb=1024):
    """x: (B, 4) float32. params: dict of (in,out) weights + (1,out) biases.

    Returns (B, 3) float32, equal to relu/linear chain of PyTorch PP.forward.
    """
    B = x.shape[0]
    # Batch tile: 1024 by default (amortizes per-grid-step overhead and MXU
    # weight pushes), but (a) don't over-pad tiny batches, (b) keep >= 2 grid
    # steps for large batches so both v7x TensorCores get work.
    tb_eff = min(tb, _round_up(B, 8))
    if B > 256:
        tb_eff = min(tb_eff, max(256, _round_up((B + 1) // 2, 256)))
    B_pad = _round_up(B, tb_eff)
    if B_pad != B:
        x = jnp.pad(x, ((0, B_pad - B), (0, 0)))
    grid = (B_pad // tb_eff,)

    # Layer-1 dtype: bf16 where the VPU supports it (v6e/v7x), else f32 (v5e).
    try:
        kind = jax.devices()[0].device_kind.lower()
    except Exception:
        kind = ""
    l1_dtype = jnp.bfloat16 if ("v6" in kind or "v7" in kind) else jnp.float32

    x = x.astype(l1_dtype)
    w1 = params["w1"].astype(l1_dtype)
    b1 = params["b1"].astype(l1_dtype)
    # Layer-2/3 weights bf16 for the MXU; biases stay f32, added after the
    # f32-accumulated matmul.
    w2 = params["w2"].astype(jnp.bfloat16)
    b2 = params["b2"].astype(jnp.float32)
    # Zero-pad the 3-wide output projection to 128 lanes (lane-dense store).
    w3p = jnp.zeros((H, OUT_PAD), jnp.bfloat16).at[:, :OUT].set(
        params["w3"].astype(jnp.bfloat16))
    b3p = jnp.zeros((1, OUT_PAD), jnp.float32).at[:, :OUT].set(
        params["b3"].astype(jnp.float32))

    # Constant index_map => weights/biases stay resident in VMEM across grid.
    full = lambda shape: pl.BlockSpec(shape, lambda i: (0, 0))

    flops = 2 * B_pad * (IN * H + H * H + H * OUT_PAD)
    bytes_accessed = int(
        x.size * x.dtype.itemsize            # x tiles in
        + B_pad * OUT_PAD * 2                # bf16 output slab out
        + w1.size * w1.dtype.itemsize + b1.size * b1.dtype.itemsize
        + w2.size * 2 + b2.size * 4
        + w3p.size * 2 + b3p.size * 4)

    out_padded = pl.pallas_call(
        mlp_kernel,
        out_shape=jax.ShapeDtypeStruct((B_pad, OUT_PAD), jnp.bfloat16),
        grid_spec=pltpu.PrefetchScalarGridSpec(
            num_scalar_prefetch=0,
            grid=grid,
            in_specs=[
                pl.BlockSpec((tb_eff, IN), lambda i: (i, 0)),  # x tile
                full((IN, H)),        # w1
                full((1, H)),         # b1
                full((H, H)),         # w2 (bf16)
                full((1, H)),         # b2 (f32)
                full((H, OUT_PAD)),   # w3 padded (bf16)
                full((1, OUT_PAD)),   # b3 padded (f32)
            ],
            out_specs=pl.BlockSpec((tb_eff, OUT_PAD), lambda i: (i, 0)),
        ),
        compiler_params=pltpu.CompilerParams(
            dimension_semantics=("parallel",)),
        cost_estimate=pl.CostEstimate(
            flops=flops, transcendentals=0, bytes_accessed=bytes_accessed),
    )(x, w1, b1, w2, b2, w3p, b3p)

    return out_padded[:B, :OUT].astype(jnp.float32)


def init_params(key):
    """Deterministic init mirroring torch.nn.Linear shapes.
    PyTorch stores W as (out, in); we store the transpose (in, out)."""
    ks = jax.random.split(key, 6)

    def linear(kw, kb, fan_in, fan_out):
        bound = 1.0 / jnp.sqrt(fan_in)
        w = jax.random.uniform(kw, (fan_in, fan_out), jnp.float32, -bound, bound)
        b = jax.random.uniform(kb, (1, fan_out), jnp.float32, -bound, bound)
        return w, b

    w1, b1 = linear(ks[0], ks[1], IN, H)
    w2, b2 = linear(ks[2], ks[3], H, H)
    w3, b3 = linear(ks[4], ks[5], H, OUT)
    return {"w1": w1, "b1": b1, "w2": w2, "b2": b2, "w3": w3, "b3": b3}


def pp_reference(x, p):
    h1 = jnp.maximum(x @ p["w1"] + p["b1"], 0.0)
    h2 = jnp.maximum(h1 @ p["w2"] + p["b2"], 0.0)
    return h2 @ p["w3"] + p["b3"]


if __name__ == "__main__":
    key = jax.random.PRNGKey(0)
    k_param, k_x = jax.random.split(key)
    params = init_params(k_param)

    B = 8
    bbox = jax.random.normal(k_x, (B, IN), jnp.float32)

    out = pp_forward(bbox, params)
    out = jax.block_until_ready(out)

    ref = pp_reference(bbox, params)
    assert out.shape == (B, OUT)
    # bf16 MXU operands (and bf16 layer-1/output on v6e/v7x) with f32
    # accumulation -> looser tolerance than pure-f32.
    assert jnp.allclose(out, ref, atol=3e-2, rtol=3e-2), (
        float(jnp.max(jnp.abs(out - ref))))

    print("KERNEL_OK")
</pallas_src>

<mosaic_0001>
module attributes {stable_mosaic.version = 11 : i64} {
  func.func @mlp_kernel(%arg0: i32, %arg1: memref<8x4xf32, #tpu.memory_space<vmem>>, %arg2: memref<4x512xf32, #tpu.memory_space<vmem>>, %arg3: memref<1x512xf32, #tpu.memory_space<vmem>>, %arg4: memref<512x512xbf16, #tpu.memory_space<vmem>>, %arg5: memref<1x512xf32, #tpu.memory_space<vmem>>, %arg6: memref<512x128xbf16, #tpu.memory_space<vmem>>, %arg7: memref<1x128xf32, #tpu.memory_space<vmem>>, %arg8: memref<8x128xbf16, #tpu.memory_space<vmem>>) attributes {dimension_semantics = [#tpu.dimension_semantics<parallel>], iteration_bounds = array<i64: 1>, scalar_prefetch = 0 : i64, scratch_operands = 0 : i64, tpu.core_type = #tpu.core_type<tc>, window_params = [{transform_indices = @transform_0, window_bounds = array<i64: 8, 4>}, {pipeline_mode = #tpu.pipeline_mode<synchronous>, transform_indices = @transform_1, window_bounds = array<i64: 4, 512>}, {pipeline_mode = #tpu.pipeline_mode<synchronous>, transform_indices = @transform_2, window_bounds = array<i64: 1, 512>}, {pipeline_mode = #tpu.pipeline_mode<synchronous>, transform_indices = @transform_3, window_bounds = array<i64: 512, 512>}, {pipeline_mode = #tpu.pipeline_mode<synchronous>, transform_indices = @transform_4, window_bounds = array<i64: 1, 512>}, {pipeline_mode = #tpu.pipeline_mode<synchronous>, transform_indices = @transform_5, window_bounds = array<i64: 512, 128>}, {pipeline_mode = #tpu.pipeline_mode<synchronous>, transform_indices = @transform_6, window_bounds = array<i64: 1, 128>}, {transform_indices = @transform_7, window_bounds = array<i64: 8, 128>}]} {
    %c0 = arith.constant 0 : index
    %c0_0 = arith.constant 0 : index
    %0 = vector.load %arg1[%c0, %c0_0] : memref<8x4xf32, #tpu.memory_space<vmem>>, vector<8x4xf32>
    %c0_1 = arith.constant 0 : index
    %c0_2 = arith.constant 0 : index
    %1 = vector.load %arg2[%c0_1, %c0_2] : memref<4x512xf32, #tpu.memory_space<vmem>>, vector<4x512xf32>
    %c0_3 = arith.constant 0 : index
    %c0_4 = arith.constant 0 : index
    %2 = vector.load %arg3[%c0_3, %c0_4] : memref<1x512xf32, #tpu.memory_space<vmem>>, vector<1x512xf32>
    %3 = vector.extract_strided_slice %0 {offsets = [0, 0], sizes = [8, 1], strides = [1, 1]} : vector<8x4xf32> to vector<8x1xf32>
    %4 = vector.extract_strided_slice %1 {offsets = [0, 0], sizes = [1, 512], strides = [1, 1]} : vector<4x512xf32> to vector<1x512xf32>
    %5 = vector.broadcast %3 : vector<8x1xf32> to vector<8x512xf32>
    %6 = vector.broadcast %4 : vector<1x512xf32> to vector<8x512xf32>
    %7 = arith.mulf %5, %6 : vector<8x512xf32>
    %8 = vector.broadcast %2 : vector<1x512xf32> to vector<8x512xf32>
    %9 = arith.addf %8, %7 : vector<8x512xf32>
    %10 = vector.extract_strided_slice %0 {offsets = [0, 1], sizes = [8, 1], strides = [1, 1]} : vector<8x4xf32> to vector<8x1xf32>
    %11 = vector.extract_strided_slice %1 {offsets = [1, 0], sizes = [1, 512], strides = [1, 1]} : vector<4x512xf32> to vector<1x512xf32>
    %12 = vector.broadcast %10 : vector<8x1xf32> to vector<8x512xf32>
    %13 = vector.broadcast %11 : vector<1x512xf32> to vector<8x512xf32>
    %14 = arith.mulf %12, %13 : vector<8x512xf32>
    %15 = arith.addf %9, %14 : vector<8x512xf32>
    %16 = vector.extract_strided_slice %0 {offsets = [0, 2], sizes = [8, 1], strides = [1, 1]} : vector<8x4xf32> to vector<8x1xf32>
    %17 = vector.extract_strided_slice %1 {offsets = [2, 0], sizes = [1, 512], strides = [1, 1]} : vector<4x512xf32> to vector<1x512xf32>
    %18 = vector.broadcast %16 : vector<8x1xf32> to vector<8x512xf32>
    %19 = vector.broadcast %17 : vector<1x512xf32> to vector<8x512xf32>
    %20 = arith.mulf %18, %19 : vector<8x512xf32>
    %21 = arith.addf %15, %20 : vector<8x512xf32>
    %22 = vector.extract_strided_slice %0 {offsets = [0, 3], sizes = [8, 1], strides = [1, 1]} : vector<8x4xf32> to vector<8x1xf32>
    %23 = vector.extract_strided_slice %1 {offsets = [3, 0], sizes = [1, 512], strides = [1, 1]} : vector<4x512xf32> to vector<1x512xf32>
    %24 = vector.broadcast %22 : vector<8x1xf32> to vector<8x512xf32>
    %25 = vector.broadcast %23 : vector<1x512xf32> to vector<8x512xf32>
    %26 = arith.mulf %24, %25 : vector<8x512xf32>
    %27 = arith.addf %21, %26 : vector<8x512xf32>
    %cst = arith.constant 0.000000e+00 : f32
    %28 = vector.broadcast %cst : f32 to vector<8x512xf32>
    %29 = arith.maximumf %27, %28 : vector<8x512xf32>
    %30 = arith.truncf %29 : vector<8x512xf32> to vector<8x512xbf16>
    %c0_5 = arith.constant 0 : index
    %c0_6 = arith.constant 0 : index
    %31 = vector.load %arg4[%c0_5, %c0_6] : memref<512x512xbf16, #tpu.memory_space<vmem>>, vector<512x512xbf16>
    %cst_7 = arith.constant dense<0.000000e+00> : vector<8x512xf32>
    %32 = tpu.matmul %30, %31, %cst_7 {dimension_numbers = #tpu.dot_dimension_numbers<[1], [0], [0], [1], [0, 0, 1, 1], [], []>} : vector<8x512xbf16>, vector<512x512xbf16>, vector<8x512xf32> -> vector<8x512xf32>
    %c0_8 = arith.constant 0 : index
    %c0_9 = arith.constant 0 : index
    %33 = vector.load %arg5[%c0_8, %c0_9] : memref<1x512xf32, #tpu.memory_space<vmem>>, vector<1x512xf32>
    %34 = vector.broadcast %33 : vector<1x512xf32> to vector<8x512xf32>
    %35 = arith.addf %32, %34 : vector<8x512xf32>
    %cst_10 = arith.constant 0.000000e+00 : f32
    %36 = vector.broadcast %cst_10 : f32 to vector<8x512xf32>
    %37 = arith.maximumf %35, %36 : vector<8x512xf32>
    %38 = arith.truncf %37 : vector<8x512xf32> to vector<8x512xbf16>
    %c0_11 = arith.constant 0 : index
    %c0_12 = arith.constant 0 : index
    %39 = vector.load %arg6[%c0_11, %c0_12] : memref<512x128xbf16, #tpu.memory_space<vmem>>, vector<512x128xbf16>
    %cst_13 = arith.constant dense<0.000000e+00> : vector<8x128xf32>
    %40 = tpu.matmul %38, %39, %cst_13 {dimension_numbers = #tpu.dot_dimension_numbers<[1], [0], [0], [1], [0, 0, 1, 1], [], []>} : vector<8x512xbf16>, vector<512x128xbf16>, vector<8x128xf32> -> vector<8x128xf32>
    %c0_14 = arith.constant 0 : index
    %c0_15 = arith.constant 0 : index
    %41 = vector.load %arg7[%c0_14, %c0_15] : memref<1x128xf32, #tpu.memory_space<vmem>>, vector<1x128xf32>
    %42 = vector.broadcast %41 : vector<1x128xf32> to vector<8x128xf32>
    %43 = arith.addf %40, %42 : vector<8x128xf32>
    %44 = arith.truncf %43 : vector<8x128xf32> to vector<8x128xbf16>
    %c0_16 = arith.constant 0 : index
    %c0_17 = arith.constant 0 : index
    %45 = vector.load %arg8[%c0_16, %c0_17] : memref<8x128xbf16, #tpu.memory_space<vmem>>, vector<8x128xbf16>
    tpu.vector_store %arg8[%c0_16, %c0_17], %44 {strides = array<i32>} : memref<8x128xbf16, #tpu.memory_space<vmem>>, vector<8x128xbf16>,
    return
  }
  func.func @transform_0(%arg0: i32) -> (i32, i32) {
    %c0_i32 = arith.constant 0 : i32
    %c0_i32_0 = arith.constant 0 : i32
    return %arg0, %c0_i32 : i32, i32
  }
  func.func @transform_1(%arg0: i32) -> (i32, i32) {
    %c0_i32 = arith.constant 0 : i32
    %c0_i32_0 = arith.constant 0 : i32
    %c0_i32_1 = arith.constant 0 : i32
    return %c0_i32, %c0_i32_0 : i32, i32
  }
  func.func @transform_2(%arg0: i32) -> (i32, i32) {
    %c0_i32 = arith.constant 0 : i32
    %c0_i32_0 = arith.constant 0 : i32
    %c0_i32_1 = arith.constant 0 : i32
    return %c0_i32, %c0_i32_0 : i32, i32
  }
  func.func @transform_3(%arg0: i32) -> (i32, i32) {
    %c0_i32 = arith.constant 0 : i32
    %c0_i32_0 = arith.constant 0 : i32
    %c0_i32_1 = arith.constant 0 : i32
    return %c0_i32, %c0_i32_0 : i32, i32
  }
  func.func @transform_4(%arg0: i32) -> (i32, i32) {
    %c0_i32 = arith.constant 0 : i32
    %c0_i32_0 = arith.constant 0 : i32
    %c0_i32_1 = arith.constant 0 : i32
    return %c0_i32, %c0_i32_0 : i32, i32
  }
  func.func @transform_5(%arg0: i32) -> (i32, i32) {
    %c0_i32 = arith.constant 0 : i32
    %c0_i32_0 = arith.constant 0 : i32
    %c0_i32_1 = arith.constant 0 : i32
    return %c0_i32, %c0_i32_0 : i32, i32
  }
  func.func @transform_6(%arg0: i32) -> (i32, i32) {
    %c0_i32 = arith.constant 0 : i32
    %c0_i32_0 = arith.constant 0 : i32
    %c0_i32_1 = arith.constant 0 : i32
    return %c0_i32, %c0_i32_0 : i32, i32
  }
  func.func @transform_7(%arg0: i32) -> (i32, i32) {
    %c0_i32 = arith.constant 0 : i32
    %c0_i32_0 = arith.constant 0 : i32
    return %arg0, %c0_i32 : i32, i32
  }
}

</mosaic_0001>

<bundles_post_ra>
// kernel: tpu_custom_call.1
= control target key start
LH: loop header
LB: loop body
LE: loop exit
PB: predicated region body
PF: predicated region fallthrough
CT: control target
= control target key end

     0   :  { %12 = vsyncpa [#allocation3], 0  ;;  %s2325_s0 = inlined_call_operand.vmem [shape: f32[8,4], index: 0, kind: input, shape index: {}]   ;;  %s2326_s1 = inlined_call_operand.hbm [shape: f32[4,512], index: 1, kind: input, shape index: {}]   ;;  %s2327_s2 = inlined_call_operand.vmem [shape: f32[1,512], index: 2, kind: input, shape index: {}]   ;;  %s2328_s3 = inlined_call_operand.hbm [shape: bf16[512,512], index: 3, kind: input, shape index: {}]   ;;  %s2329_s4 = inlined_call_operand.vmem [shape: f32[1,512], index: 4, kind: input, shape index: {}]   ;;  %s2330_s5 = inlined_call_operand.hbm [shape: bf16[512,128], index: 5, kind: input, shape index: {}]   ;;  %s2331_s6 = inlined_call_operand.vmem [shape: f32[1,128], index: 6, kind: input, shape index: {}]   ;;  %s2332_s7 = inlined_call_operand.hbm [shape: bf16[8,128], index: 7, kind: output, shape index: {}]  }
   0x1   :  { %13 = vsyncpa [#allocation6], 0 }
   0x2   :  { %14 = vsyncpa [#allocation4], 0  ;;  %s2170_s24 = smov [#allocation5]   ;;  %s2076_s28 = scalar_lea.hbm %s2328_s3, 16384 }
   0x3   :  { %s34_s25 = sshll.u32 %s2170_s24, 4  ;;  %p2077_p0 = scmp.ne.s32.totalorder %s2328_s3, %s2076_s28  ;;  %s35_s25 = int_to_ptr.vmem [resolvable:$true] %s34_s25 }
   0x4   :  { %p2080_p1 = scmp.lt.u32.totalorder %s2076_s28, %s2328_s3 }
   0x6   :  { %p2082_p2 = pnand %p2080_p1, %p2077_p0 }
   0x8   :  { %2085 = shalt.err (!%p2082_p2)
}
   0x9   :  { %s2086_s10 = scalar_lea.vmem %s35_s25, 16384  ;;  %p2091_p4 = scmp.lt.s32.totalorder %s35_s25, %s35_s25 }
   0xa   :  { %p2087_p3 = scmp.ne.s32.totalorder %s35_s25, %s2086_s10  ;;  %p2092_p5 = scmp.lt.s32.totalorder %s2086_s10, %s2086_s10 }
   0xc   :  { %p2093_p6 = por %p2092_p5, %p2091_p4 }
   0xe   :  { %p2094_p7 = pnand %p2093_p6, %p2087_p3 }
  0x10   :  { %2097 = shalt.err (!%p2094_p7)
}
  0x11   :  { %s2171_s11 = smov 256   ;;  %s2172_s12 = smov 16  }
  0x12   :  { %40 = dma.hbm_to_vmem [thread:$0]  %s2328_s3, 16384, %s35_s25, [#allocation6], %s2171_s11, %s2171_s11, %s2172_s12  }
  0x13   :  { %s2173_s15 = smov [#allocation2]   ;;  %s2174_s17 = smov [#allocation7]  }
  0x14   :  { %s23_s16 = sshll.u32 %s2173_s15, 4  ;;  %s48_s18 = sshll.u32 %s2174_s17, 4  ;;  %s24_s16 = int_to_ptr.vmem [resolvable:$true] %s23_s16  ;;  %s49_s18 = int_to_ptr.vmem [resolvable:$true] %s48_s18 }
  0x15   :  { %s2098_s21 = scalar_lea.hbm %s2326_s1, 256 }
  0x16   :  { %p2099_p8 = scmp.ne.s32.totalorder %s2326_s1, %s2098_s21  ;;  %p2102_p9 = scmp.lt.u32.totalorder %s2098_s21, %s2326_s1 }
  0x18   :  { %p2104_p10 = pnand %p2102_p9, %p2099_p8 }
  0x1a   :  { %2107 = shalt.err (!%p2104_p10)
}
  0x1b   :  { %s2108_s3 = scalar_lea.vmem %s24_s16, 256  ;;  %p2113_p12 = scmp.lt.s32.totalorder %s24_s16, %s24_s16 }
  0x1c   :  { %p2109_p11 = scmp.ne.s32.totalorder %s24_s16, %s2108_s3  ;;  %p2114_p13 = scmp.lt.s32.totalorder %s2108_s3, %s2108_s3 }
  0x1e   :  { %p2115_p0 = por %p2114_p13, %p2113_p12 }
  0x20   :  { %p2116_p1 = pnand %p2115_p0, %p2109_p11 }
  0x22   :  { %2119 = shalt.err (!%p2116_p1)
}
  0x23   :  { %26 = dma.hbm_to_vmem [thread:$0]  %s2326_s1, 256, %s24_s16, [#allocation3]  }
  0x24   :  { %s2120_s30 = scalar_lea.hbm %s2330_s5, 4096 }
  0x25   :  { %p2121_p2 = scmp.ne.s32.totalorder %s2330_s5, %s2120_s30  ;;  %p2124_p3 = scmp.lt.u32.totalorder %s2120_s30, %s2330_s5 }
  0x27   :  { %p2126_p4 = pnand %p2124_p3, %p2121_p2 }
  0x29   :  { %2129 = shalt.err (!%p2126_p4)
}
  0x2a   :  { %s2130_s12 = scalar_lea.vmem %s49_s18, 4096  ;;  %p2135_p6 = scmp.lt.s32.totalorder %s49_s18, %s49_s18 }
  0x2b   :  { %p2131_p5 = scmp.ne.s32.totalorder %s49_s18, %s2130_s12  ;;  %p2136_p7 = scmp.lt.s32.totalorder %s2130_s12, %s2130_s12 }
  0x2d   :  { %p2137_p8 = por %p2136_p7, %p2135_p6 }
  0x2f   :  { %p2138_p9 = pnand %p2137_p8, %p2131_p5 }
  0x31   :  { %2141 = shalt.err (!%p2138_p9)
}
  0x32   :  { %s2175_s1 = smov 64   ;;  %s2176_s13 = smov 4  }
  0x33   :  { %54 = dma.hbm_to_vmem [thread:$0]  %s2330_s5, 4096, %s49_s18, [#allocation6], %s2175_s1, %s2175_s1, %s2176_s13  }
  0x34   :  { %2164 = dma.done.wait [#allocation3], 256  }
  0x35   :  { %2165 = vsyncadd [#allocation3], 4294967040 }
  0x36   :  { %2166 = dma.done.wait [#allocation6], 20480  }
  0x37   :  { %2167 = vsyncadd [#allocation6], 4294946816  ;;  %v2177_v0 = vmov 0   ;;  %v2178_v1 = vmov 2   ;;  %v67_v2 = vld [vmem:[%s2325_s0] sm:$0xff]  ;;  %v2179_v9 = vmov 1  }
  0x38   :  { %1847 = vset.pattern.permute.xlu0 %v2177_v0  ;;  %1849 = vset.pattern.permute.xlu1 %v2178_v1  ;;  %v1852_v3 = vld [vmem:[#allocation5 + $0x4] ss:$16 sps:$4 sm:$0xff]   ;;  %v1854_v4 = vld [vmem:[#allocation5 + $0xc] ss:$16 sps:$4 sm:$0xff]   ;;  %v1856_v5 = vld [vmem:[#allocation5] ss:$16 sps:$4 sm:$0xff]  }
  0x39   :  { %73 = vperm.xlu0 %1847, %v67_v2   ;;  %192 = vperm.xlu1 %1849, %v67_v2   ;;  %v1857_v6 = vld [vmem:[#allocation5 + $0x8] ss:$16 sps:$4 sm:$0xff]   ;;  %v1858_v7 = vld [vmem:[#allocation5 + $0x24] ss:$16 sps:$4 sm:$0xff]   ;;  %v1860_v8 = vld [vmem:[#allocation5 + $0x2c] ss:$16 sps:$4 sm:$0xff]  }
  0x3a   :  { %1085 = vmatprep.subr.bf16.mxu0 %v1852_v3  ;;  %1167 = vmatprep.subr.bf16.mxu1 %v1854_v4  ;;  %v2180_v10 = vmov 3   ;;  %v1862_v11 = vld [vmem:[#allocation5 + $0x20] ss:$16 sps:$4 sm:$0xff]   ;;  %v1864_v12 = vld [vmem:[#allocation5 + $0x44] ss:$16 sps:$4 sm:$0xff]   ;;  %s2181_s20 = smov [#allocation8]  }
  0x3b   :  { %1086 = vmatpush1.bf16.msra.mxu0 %v1856_v5  ;;  %1168 = vmatpush1.bf16.msra.mxu1 %v1857_v6  ;;  %v1863_v13 = vld [vmem:[#allocation5 + $0x28] ss:$16 sps:$4 sm:$0xff]   ;;  %v1866_v14 = vld [vmem:[#allocation5 + $0x4c] ss:$16 sps:$4 sm:$0xff]   ;;  %v1868_v15 = vld [vmem:[#allocation5 + $0x40] ss:$16 sps:$4 sm:$0xff]  }
  0x3c   :  { %1087 = vmatprep.subr.bf16.mxu0 %v1858_v7  ;;  %1169 = vmatprep.subr.bf16.mxu1 %v1860_v8  ;;  %v1870_v16 = vld [vmem:[#allocation5 + $0x64] ss:$16 sps:$4 sm:$0xff]   ;;  %v1869_v17 = vld [vmem:[#allocation5 + $0x48] ss:$16 sps:$4 sm:$0xff]   ;;  %v1872_v18 = vld [vmem:[#allocation5 + $0x6c] ss:$16 sps:$4 sm:$0xff]   ;;  %v78_v7 = vlaneseq }
  0x3d   :  { %1848 = vset.pattern.permute.xlu0 %v2179_v9  ;;  %1850 = vset.pattern.permute.xlu1 %v2180_v10  ;;  %v1874_v19 = vld [vmem:[#allocation5 + $0x60] ss:$16 sps:$4 sm:$0xff]   ;;  %v1876_v20 = vld [vmem:[#allocation5 + $0x84] ss:$16 sps:$4 sm:$0xff]   ;;  %v1875_v21 = vld [vmem:[#allocation5 + $0x68] ss:$16 sps:$4 sm:$0xff]  }
  0x3e   :  { %144 = vperm.xlu0 %1848, %v67_v2   ;;  %240 = vperm.xlu1 %1850, %v67_v2   ;;  %v1878_v22 = vld [vmem:[#allocation5 + $0x8c] ss:$16 sps:$4 sm:$0xff]   ;;  %v1880_v23 = vld [vmem:[#allocation5 + $0x80] ss:$16 sps:$4 sm:$0xff]   ;;  %v1882_v24 = vld [vmem:[#allocation5 + $0xa4] ss:$16 sps:$4 sm:$0xff]  }
  0x3f   :  { %1088 = vmatpush1.bf16.msra.mxu0 %v1862_v11  ;;  %1170 = vmatpush1.bf16.msra.mxu1 %v1863_v13  ;;  %v1881_v25 = vld [vmem:[#allocation5 + $0x88] ss:$16 sps:$4 sm:$0xff]   ;;  %v1884_v26 = vld [vmem:[#allocation5 + $0xac] ss:$16 sps:$4 sm:$0xff]   ;;  %v1886_v27 = vld [vmem:[#allocation5 + $0xa0] ss:$16 sps:$4 sm:$0xff]  }
  0x40   :  { %1089 = vmatprep.subr.bf16.mxu0 %v1864_v12  ;;  %1171 = vmatprep.subr.bf16.mxu1 %v1866_v14  ;;  %v1888_v28 = vld [vmem:[#allocation5 + $0xc4] ss:$16 sps:$4 sm:$0xff]   ;;  %v1887_v29 = vld [vmem:[#allocation5 + $0xa8] ss:$16 sps:$4 sm:$0xff]   ;;  %v1890_v30 = vld [vmem:[#allocation5 + $0xcc] ss:$16 sps:$4 sm:$0xff]  }
  0x41   :  { %v1892_v31 = vld [vmem:[#allocation5 + $0xc0] ss:$16 sps:$4 sm:$0xff]   ;;  %v1894_v32 = vld [vmem:[#allocation5 + $0xe4] ss:$16 sps:$4 sm:$0xff]   ;;  %v1893_v33 = vld [vmem:[#allocation5 + $0xc8] ss:$16 sps:$4 sm:$0xff]  }
  0x42   :  { %1851 = vset.pattern.permute.xlu0 %v2180_v10  ;;  %v1896_v34 = vld [vmem:[#allocation5 + $0xec] ss:$16 sps:$4 sm:$0xff]   ;;  %v1898_v35 = vld [vmem:[#allocation5 + $0xe0] ss:$16 sps:$4 sm:$0xff]   ;;  %v1900_v36 = vld [vmem:[#allocation5 + $0x104] ss:$16 sps:$4 sm:$0xff]  }
  0x43   :  { %1090 = vmatpush1.bf16.msra.mxu0 %v1868_v15  ;;  %1172 = vmatpush1.bf16.msra.mxu1 %v1869_v17  ;;  %v1899_v37 = vld [vmem:[#allocation5 + $0xe8] ss:$16 sps:$4 sm:$0xff]   ;;  %v1902_v38 = vld [vmem:[#allocation5 + $0x10c] ss:$16 sps:$4 sm:$0xff]   ;;  %v1904_v39 = vld [vmem:[#allocation5 + $0x100] ss:$16 sps:$4 sm:$0xff]  }
  0x44   :  { %1091 = vmatprep.subr.bf16.mxu0 %v1870_v16  ;;  %1173 = vmatprep.subr.bf16.mxu1 %v1872_v18  ;;  %v1906_v40 = vld [vmem:[#allocation5 + $0x124] ss:$16 sps:$4 sm:$0xff]   ;;  %v1905_v41 = vld [vmem:[#allocation5 + $0x108] ss:$16 sps:$4 sm:$0xff]   ;;  %v1908_v42 = vld [vmem:[#allocation5 + $0x12c] ss:$16 sps:$4 sm:$0xff]  }
  0x45   :  { %v1910_v43 = vld [vmem:[#allocation5 + $0x120] ss:$16 sps:$4 sm:$0xff]   ;;  %v1912_v44 = vld [vmem:[#allocation5 + $0x144] ss:$16 sps:$4 sm:$0xff]   ;;  %v1911_v45 = vld [vmem:[#allocation5 + $0x128] ss:$16 sps:$4 sm:$0xff]  }
  0x46   :  { %v1914_v46 = vld [vmem:[#allocation5 + $0x14c] ss:$16 sps:$4 sm:$0xff]   ;;  %v1916_v47 = vld [vmem:[#allocation5 + $0x140] ss:$16 sps:$4 sm:$0xff]   ;;  %v1918_v48 = vld [vmem:[#allocation5 + $0x164] ss:$16 sps:$4 sm:$0xff]  }
  0x47   :  { %1092 = vmatpush1.bf16.msra.mxu0 %v1874_v19  ;;  %1174 = vmatpush1.bf16.msra.mxu1 %v1875_v21  ;;  %v1917_v49 = vld [vmem:[#allocation5 + $0x148] ss:$16 sps:$4 sm:$0xff]   ;;  %v1920_v50 = vld [vmem:[#allocation5 + $0x16c] ss:$16 sps:$4 sm:$0xff]   ;;  %v1922_v51 = vld [vmem:[#allocation5 + $0x160] ss:$16 sps:$4 sm:$0xff]  }
  0x48   :  { %1093 = vmatprep.subr.bf16.mxu0 %v1876_v20  ;;  %1175 = vmatprep.subr.bf16.mxu1 %v1878_v22  ;;  %v1924_v52 = vld [vmem:[#allocation5 + $0x184] ss:$16 sps:$4 sm:$0xff]   ;;  %v1923_v53 = vld [vmem:[#allocation5 + $0x168] ss:$16 sps:$4 sm:$0xff]   ;;  %v1926_v54 = vld [vmem:[#allocation5 + $0x18c] ss:$16 sps:$4 sm:$0xff]  }
  0x49   :  { %v1928_v55 = vld [vmem:[#allocation5 + $0x180] ss:$16 sps:$4 sm:$0xff]   ;;  %v1930_v56 = vld [vmem:[#allocation5 + $0x1a4] ss:$16 sps:$4 sm:$0xff]   ;;  %v1929_v57 = vld [vmem:[#allocation5 + $0x188] ss:$16 sps:$4 sm:$0xff]  }
  0x4a   :  { %v1932_v58 = vld [vmem:[#allocation5 + $0x1ac] ss:$16 sps:$4 sm:$0xff]   ;;  %v1934_v59 = vld [vmem:[#allocation5 + $0x1a0] ss:$16 sps:$4 sm:$0xff]   ;;  %v1936_v60 = vld [vmem:[#allocation5 + $0x1c4] ss:$16 sps:$4 sm:$0xff]  }
  0x4b   :  { %1094 = vmatpush1.bf16.msra.mxu0 %v1880_v23  ;;  %1176 = vmatpush1.bf16.msra.mxu1 %v1881_v25  ;;  %v1935_v61 = vld [vmem:[#allocation5 + $0x1a8] ss:$16 sps:$4 sm:$0xff]   ;;  %v1938_v62 = vld [vmem:[#allocation5 + $0x1cc] ss:$16 sps:$4 sm:$0xff]   ;;  %v1940_v63 = vld [vmem:[#allocation5 + $0x1c0] ss:$16 sps:$4 sm:$0xff]  }
  0x4c   :  { %1095 = vmatprep.subr.bf16.mxu0 %v1882_v24  ;;  %1177 = vmatprep.subr.bf16.mxu1 %v1884_v26  ;;  %v1942_v0 = vld [vmem:[#allocation5 + $0x1e4] ss:$16 sps:$4 sm:$0xff]   ;;  %v1941_v1 = vld [vmem:[#allocation5 + $0x1c8] ss:$16 sps:$4 sm:$0xff]   ;;  %v1944_v2 = vld [vmem:[#allocation5 + $0x1ec] ss:$16 sps:$4 sm:$0xff]  }
  0x4d   :  { %v1946_v3 = vld [vmem:[#allocation5 + $0x1e0] ss:$16 sps:$4 sm:$0xff]   ;;  %v1950_v4 = vld [vmem:[#allocation5 + $0x204] ss:$16 sps:$4 sm:$0xff]   ;;  %v1947_v5 = vld [vmem:[#allocation5 + $0x1e8] ss:$16 sps:$4 sm:$0xff]  }
  0x4e   :  { %v1953_v6 = vld [vmem:[#allocation5 + $0x20c] ss:$16 sps:$4 sm:$0xff]   ;;  %v79_v8 = vshrl.u32 %v78_v7, 7  ;;  %v68_v11 = vld [vmem:[#allocation2] sm:$0xff]  ;;  %s1608_s21 = sshll.u32 %s2181_s20, 4  ;;  %s1609_s21 = int_to_ptr.vmem [resolvable:$true] %s1608_s21 }
  0x4f   :  { %1096 = vmatpush1.bf16.msra.mxu0 %v1886_v27  ;;  %1178 = vmatpush1.bf16.msra.mxu1 %v1887_v29  ;;  %v69_v12 = vld [vmem:[#allocation2 + $0x8] sm:$0xff]  ;;  %v70_v27 = vld [vmem:[%s2327_s2] sm:$0xf]  ;;  %s2142_s22 = scalar_lea.vmem %s1609_s21, 64  ;;  %p2147_p11 = scmp.lt.s32.totalorder %s1609_s21, %s1609_s21 }
  0x50   :  { %1097 = vmatprep.subr.bf16.mxu0 %v1888_v28  ;;  %1179 = vmatprep.subr.bf16.mxu1 %v1890_v30  ;;  %v2261_v9 = vsub.s32 0, %v79_v8  ;;  %v84_v10 = vsub.s32 4, %v79_v8  ;;  %v2263_v13 = vsub.s32 2, %v79_v8  ;;  %v201_v14 = vsub.s32 6, %v79_v8  ;;  %p2143_p10 = scmp.ne.s32.totalorder %s1609_s21, %s2142_s22  ;;  %p2148_p12 = scmp.lt.s32.totalorder %s2142_s22, %s2142_s22 }
  0x51   :  { %v2267_v19 = vsub.s32 1, %v79_v8  ;;  %v153_v20 = vsub.s32 5, %v79_v8  ;;  %v2276_v28 = vsub.s32 3, %v79_v8  ;;  %v249_v29 = vsub.s32 7, %v79_v8 }
  0x52   :  { %v81_v15 = vrot.slane %v68_v11, %v2261_v9  ;;  %v85_v16 = vrot.slane %v68_v11, %v84_v10  ;;  %v89_v17 = vrot.slane %v69_v12, %v2261_v9  ;;  %v93_v18 = vrot.slane %v69_v12, %v84_v10  ;;  %p2149_p13 = por %p2148_p12, %p2147_p11 }
  0x53   :  { %1098 = vmatpush1.bf16.msra.mxu0 %v1892_v31  ;;  %1180 = vmatpush1.bf16.msra.mxu1 %v1893_v33  ;;  %v198_v21 = vrot.slane %v68_v11, %v2263_v13  ;;  %v202_v22 = vrot.slane %v68_v11, %v201_v14  ;;  %v206_v23 = vrot.slane %v69_v12, %v2263_v13 }
  0x54   :  { %1099 = vmatprep.subr.bf16.mxu0 %v1894_v32  ;;  %1181 = vmatprep.subr.bf16.mxu1 %v1896_v34  ;;  %v210_v24 = vrot.slane %v69_v12, %v201_v14  ;;  %v101_v25 = vrot.slane %v81_v15, %v2261_v9  ;;  %v105_v26 = vrot.slane %v85_v16, %v2261_v9  ;;  %p2150_p0 = pnand %p2149_p13, %p2143_p10 }
  0x55   :  { %v109_v30 = vrot.slane %v89_v17, %v2261_v9  ;;  %v113_v31 = vrot.slane %v93_v18, %v2261_v9  ;;  %v150_v32 = vrot.slane %v68_v11, %v2267_v19  ;;  %v154_v33 = vrot.slane %v68_v11, %v153_v20 }
  0x56   :  { %v218_v34 = vrot.slane %v198_v21, %v2263_v13 }
  0x57   :  { %1100 = vmatpush1.bf16.msra.mxu0 %v1898_v35  ;;  %1182 = vmatpush1.bf16.msra.mxu1 %v1899_v37  ;;  %v222_v35 = vrot.slane %v202_v22, %v2263_v13  ;;  %v230_v37 = vrot.slane %v210_v24, %v2263_v13 }
  0x58   :  { %1101 = vmatprep.subr.bf16.mxu0 %v1900_v36  ;;  %1183 = vmatprep.subr.bf16.mxu1 %v1902_v38  ;;  %v226_v36 = vrot.slane %v206_v23, %v2263_v13  ;;  %v122_v38 = vrot.slane %v70_v27, %v2261_v9 }
  0x5b   :  { %1102 = vmatpush1.bf16.msra.mxu0 %v1904_v39  ;;  %1184 = vmatpush1.bf16.msra.mxu1 %v1905_v41  ;;  %v158_v39 = vrot.slane %v69_v12, %v2267_v19  ;;  %v246_v41 = vrot.slane %v68_v11, %v2276_v28 }
  0x5c   :  { %1103 = vmatprep.subr.bf16.mxu0 %v1906_v40  ;;  %1185 = vmatprep.subr.bf16.mxu1 %v1908_v42  ;;  %v162_v40 = vrot.slane %v69_v12, %v153_v20  ;;  %v130_v42 = vrot.slane %v70_v27, %v2263_v13 }
  0x5f   :  { %1104 = vmatpush1.bf16.msra.mxu0 %v1910_v43  ;;  %1186 = vmatpush1.bf16.msra.mxu1 %v1911_v45  ;;  %v250_v43 = vrot.slane %v68_v11, %v249_v29  ;;  %v258_v45 = vrot.slane %v69_v12, %v249_v29 }
  0x60   :  { %1105 = vmatprep.subr.bf16.mxu0 %v1912_v44  ;;  %1187 = vmatprep.subr.bf16.mxu1 %v1914_v46  ;;  %v254_v44 = vrot.slane %v69_v12, %v2276_v28 }
  0x63   :  { %1106 = vmatpush1.bf16.msra.mxu0 %v1916_v47  ;;  %1188 = vmatpush1.bf16.msra.mxu1 %v1917_v49  ;;  %v134_v49 = vrot.slane %v70_v27, %v2276_v28 }
  0x64   :  { %1107 = vmatprep.subr.bf16.mxu0 %v1918_v48  ;;  %1189 = vmatprep.subr.bf16.mxu1 %v1920_v50  ;;  %v126_v48 = vrot.slane %v70_v27, %v2267_v19  ;;  %v170_v50 = vrot.slane %v150_v32, %v2267_v19 }
  0x67   :  { %1108 = vmatpush1.bf16.msra.mxu0 %v1922_v51  ;;  %1190 = vmatpush1.bf16.msra.mxu1 %v1923_v53  ;;  %v174_v51 = vrot.slane %v154_v33, %v2267_v19 }
  0x68   :  { %1109 = vmatprep.subr.bf16.mxu0 %v1924_v52  ;;  %1191 = vmatprep.subr.bf16.mxu1 %v1926_v54 }
  0x6b   :  { %1110 = vmatpush1.bf16.msra.mxu0 %v1928_v55  ;;  %1192 = vmatpush1.bf16.msra.mxu1 %v1929_v57  ;;  %v178_v57 = vrot.slane %v158_v39, %v2267_v19  ;;  %v1956_v39 = vld [vmem:[#allocation5 + $0x224] ss:$16 sps:$4 sm:$0xff]  }
  0x6c   :  { %1111 = vmatprep.subr.bf16.mxu0 %v1930_v56  ;;  %1193 = vmatprep.subr.bf16.mxu1 %v1932_v58  ;;  %v182_v58 = vrot.slane %v162_v40, %v2267_v19  ;;  %v1959_v40 = vld [vmem:[#allocation5 + $0x22c] ss:$16 sps:$4 sm:$0xff]  }
  0x6f   :  { %1112 = vmatpush1.bf16.msra.mxu0 %v1934_v59  ;;  %1194 = vmatpush1.bf16.msra.mxu1 %v1935_v61  ;;  %v266_v59 = vrot.slane %v246_v41, %v2276_v28  ;;  %v270_v61 = vrot.slane %v250_v43, %v2276_v28  ;;  %v1957_v43 = vld [vmem:[#allocation5 + $0x228] ss:$16 sps:$4 sm:$0xff]  }
  0x70   :  { %1113 = vmatprep.subr.bf16.mxu0 %v1936_v60  ;;  %1195 = vmatprep.subr.bf16.mxu1 %v1938_v62  ;;  %v274_v62 = vrot.slane %v254_v44, %v2276_v28  ;;  %v1962_v44 = vld [vmem:[#allocation5 + $0x244] ss:$16 sps:$4 sm:$0xff]  }
  0x73   :  { %1114 = vmatpush1.bf16.msra.mxu0 %v1940_v63  ;;  %1196 = vmatpush1.bf16.msra.mxu1 %v1941_v1  ;;  %v278_v63 = vrot.slane %v258_v45, %v2276_v28  ;;  %v1965_v45 = vld [vmem:[#allocation5 + $0x24c] ss:$16 sps:$4 sm:$0xff]  }
  0x74   :  { %1115 = vmatprep.subr.bf16.mxu0 %v1942_v0  ;;  %1197 = vmatprep.subr.bf16.mxu1 %v1944_v2 }
  0x77   :  { %1116 = vmatpush1.bf16.msra.mxu0 %v1946_v3  ;;  %1198 = vmatpush1.bf16.msra.mxu1 %v1947_v5 }
  0x78   :  { %1126 = vmatprep.subr.bf16.mxu0 %v1950_v4  ;;  %1208 = vmatprep.subr.bf16.mxu1 %v1953_v6 }
  0xb8   :  { %v74_v46 = vpop.permute.xlu0 %73  ;;  %v193_v47 = vpop.permute.xlu1 %192 }
  0xb9   :  { %v114_v52 = vmul.f32 %v101_v25, %v74_v46  ;;  %v115_v53 = vmul.f32 %v105_v26, %v74_v46  ;;  %v116_v54 = vmul.f32 %v109_v30, %v74_v46  ;;  %v117_v55 = vmul.f32 %v113_v31, %v74_v46  ;;  %v1960_v46 = vld [vmem:[#allocation5 + $0x240] ss:$16 sps:$4 sm:$0xff]  }
  0xba   :  { %v233_v56 = vmul.f32 %v226_v36, %v193_v47  ;;  %v231_v0 = vmul.f32 %v218_v34, %v193_v47  ;;  %v232_v1 = vmul.f32 %v222_v35, %v193_v47  ;;  %v234_v2 = vmul.f32 %v230_v37, %v193_v47  ;;  %v1948_v36 = vld [vmem:[#allocation5 + $0x200] ss:$16 sps:$4 sm:$0xff]   ;;  %v1951_v37 = vld [vmem:[#allocation5 + $0x208] ss:$16 sps:$4 sm:$0xff]  }
  0xbb   :  { %v141_v60 = vadd.f32 %v130_v42, %v116_v54  ;;  %v139_v3 = vadd.f32 %v122_v38, %v114_v52  ;;  %v140_v4 = vadd.f32 %v126_v48, %v115_v53  ;;  %v142_v5 = vadd.f32 %v134_v49, %v117_v55  ;;  %v1954_v42 = vld [vmem:[#allocation5 + $0x220] ss:$16 sps:$4 sm:$0xff]   ;;  %v1963_v47 = vld [vmem:[#allocation5 + $0x248] ss:$16 sps:$4 sm:$0xff]   ;;  %v1968_v48 = vld [vmem:[#allocation5 + $0x264] ss:$16 sps:$4 sm:$0xff]  }
  0xbc   :  { %v1971_v49 = vld [vmem:[#allocation5 + $0x26c] ss:$16 sps:$4 sm:$0xff]   ;;  %v1974_v52 = vld [vmem:[#allocation5 + $0x284] ss:$16 sps:$4 sm:$0xff]   ;;  %v1972_v54 = vld [vmem:[#allocation5 + $0x280] ss:$16 sps:$4 sm:$0xff]  }
  0xbd   :  { %v145_v6 = vpop.permute.xlu0 %144  ;;  %v241_v7 = vpop.permute.xlu1 %240  ;;  %v1977_v53 = vld [vmem:[#allocation5 + $0x28c] ss:$16 sps:$4 sm:$0xff]   ;;  %v1975_v55 = vld [vmem:[#allocation5 + $0x288] ss:$16 sps:$4 sm:$0xff]  }
  0xbe   :  { %v183_v8 = vmul.f32 %v170_v50, %v145_v6  ;;  %v184_v10 = vmul.f32 %v174_v51, %v145_v6  ;;  %v185_v11 = vmul.f32 %v178_v57, %v145_v6  ;;  %v186_v12 = vmul.f32 %v182_v58, %v145_v6  ;;  %v1966_v50 = vld [vmem:[#allocation5 + $0x260] ss:$16 sps:$4 sm:$0xff]   ;;  %v1969_v51 = vld [vmem:[#allocation5 + $0x268] ss:$16 sps:$4 sm:$0xff]   ;;  %v1983_v57 = vld [vmem:[#allocation5 + $0x2ac] ss:$16 sps:$4 sm:$0xff]  }
  0xbf   :  { %v279_v14 = vmul.f32 %v266_v59, %v241_v7  ;;  %v280_v15 = vmul.f32 %v270_v61, %v241_v7  ;;  %v281_v16 = vmul.f32 %v274_v62, %v241_v7  ;;  %v282_v17 = vmul.f32 %v278_v63, %v241_v7  ;;  %v1978_v58 = vld [vmem:[#allocation5 + $0x2a0] ss:$16 sps:$4 sm:$0xff]   ;;  %v1981_v59 = vld [vmem:[#allocation5 + $0x2a8] ss:$16 sps:$4 sm:$0xff]   ;;  %v1989_v61 = vld [vmem:[#allocation5 + $0x2cc] ss:$16 sps:$4 sm:$0xff]  }
  0xc0   :  { %v187_v18 = vadd.f32 %v183_v8, %v139_v3  ;;  %v188_v20 = vadd.f32 %v184_v10, %v140_v4  ;;  %v189_v21 = vadd.f32 %v185_v11, %v141_v60  ;;  %v190_v22 = vadd.f32 %v186_v12, %v142_v5  ;;  %v1986_v60 = vld [vmem:[#allocation5 + $0x2c4] ss:$16 sps:$4 sm:$0xff]   ;;  %v1984_v62 = vld [vmem:[#allocation5 + $0x2c0] ss:$16 sps:$4 sm:$0xff]   ;;  %v1987_v63 = vld [vmem:[#allocation5 + $0x2c8] ss:$16 sps:$4 sm:$0xff]  }
  0xc1   :  { %v1993_v3 = vld [vmem:[#allocation5 + $0x2e8] ss:$16 sps:$4 sm:$0xff]   ;;  %v1998_v4 = vld [vmem:[#allocation5 + $0x304] ss:$16 sps:$4 sm:$0xff]   ;;  %v2001_v5 = vld [vmem:[#allocation5 + $0x30c] ss:$16 sps:$4 sm:$0xff]  }
  0xc2   :  { %v237_v23 = vadd.f32 %v233_v56, %v189_v21  ;;  %v236_v24 = vadd.f32 %v232_v1, %v188_v20  ;;  %v235_v25 = vadd.f32 %v231_v0, %v187_v18  ;;  %v238_v26 = vadd.f32 %v234_v2, %v190_v22  ;;  %v1980_v56 = vld [vmem:[#allocation5 + $0x2a4] ss:$16 sps:$4 sm:$0xff]   ;;  %v1995_v1 = vld [vmem:[#allocation5 + $0x2ec] ss:$16 sps:$4 sm:$0xff]   ;;  %v1990_v2 = vld [vmem:[#allocation5 + $0x2e0] ss:$16 sps:$4 sm:$0xff]  }
  0xc3   :  { %v1992_v0 = vld [vmem:[#allocation5 + $0x2e4] ss:$16 sps:$4 sm:$0xff]   ;;  %v1996_v6 = vld [vmem:[#allocation5 + $0x300] ss:$16 sps:$4 sm:$0xff]   ;;  %v1999_v7 = vld [vmem:[#allocation5 + $0x308] ss:$16 sps:$4 sm:$0xff]  }
  0xc4   :  { %v2300_v27 = vadd.f32 %v281_v16, %v237_v23  ;;  %v284_v29 = vadd.f32 %v280_v15, %v236_v24  ;;  %v283_v30 = vadd.f32 %v279_v14, %v235_v25  ;;  %v286_v31 = vadd.f32 %v282_v17, %v238_v26  ;;  %v2004_v8 = vld [vmem:[#allocation5 + $0x324] ss:$16 sps:$4 sm:$0xff]   ;;  %v2007_v10 = vld [vmem:[#allocation5 + $0x32c] ss:$16 sps:$4 sm:$0xff]   ;;  %v2002_v11 = vld [vmem:[#allocation5 + $0x320] ss:$16 sps:$4 sm:$0xff]  }
  0xc5   :  { %v2005_v12 = vld [vmem:[#allocation5 + $0x328] ss:$16 sps:$4 sm:$0xff]   ;;  %v2010_v14 = vld [vmem:[#allocation5 + $0x344] ss:$16 sps:$4 sm:$0xff]   ;;  %v2013_v15 = vld [vmem:[#allocation5 + $0x34c] ss:$16 sps:$4 sm:$0xff]  }
  0xc6   :  { %v288_v32 = vmax.f32 %v284_v29, 0.0  ;;  %v287_v33 = vmax.f32 %v283_v30, 0.0  ;;  %v290_v34 = vmax.f32 %v286_v31, 0.0  ;;  %v2008_v16 = vld [vmem:[#allocation5 + $0x340] ss:$16 sps:$4 sm:$0xff]  }
  0xc7   :  { %v2011_v17 = vld [vmem:[#allocation5 + $0x348] ss:$16 sps:$4 sm:$0xff]   ;;  %v2016_v18 = vld [vmem:[#allocation5 + $0x364] ss:$16 sps:$4 sm:$0xff]   ;;  %v2019_v20 = vld [vmem:[#allocation5 + $0x36c] ss:$16 sps:$4 sm:$0xff]  }
  0xc8   :  { %v292_v35 = vpack.c.bf16 %v288_v32, %v288_v32  ;;  %v291_v38 = vpack.c.bf16 %v287_v33, %v287_v33  ;;  %v294_v41 = vpack.c.bf16 %v290_v34, %v290_v34  ;;  %v2014_v21 = vld [vmem:[#allocation5 + $0x360] ss:$16 sps:$4 sm:$0xff]   ;;  %v2017_v22 = vld [vmem:[#allocation5 + $0x368] ss:$16 sps:$4 sm:$0xff]   ;;  %v2022_v23 = vld [vmem:[#allocation5 + $0x384] ss:$16 sps:$4 sm:$0xff]  }
  0xc9   :  { %v2025_v24 = vld [vmem:[#allocation5 + $0x38c] ss:$16 sps:$4 sm:$0xff]   ;;  %v2020_v25 = vld [vmem:[#allocation5 + $0x380] ss:$16 sps:$4 sm:$0xff]   ;;  %v2023_v26 = vld [vmem:[#allocation5 + $0x388] ss:$16 sps:$4 sm:$0xff]  }
  0xca   :  { %1117 = vmatprep.mubr.bf16.mxu0 %v292_v35  ;;  %1199 = vmatprep.mubr.bf16.mxu1 %v292_v35  ;;  %v2028_v29 = vld [vmem:[#allocation5 + $0x3a4] ss:$16 sps:$4 sm:$0xff]   ;;  %v2031_v30 = vld [vmem:[#allocation5 + $0x3ac] ss:$16 sps:$4 sm:$0xff]   ;;  %v2026_v31 = vld [vmem:[#allocation5 + $0x3a0] ss:$16 sps:$4 sm:$0xff]  }
  0xcb   :  { %1118 = vmatmul.mubr.bf16.vlgmr.msra.gmra.mrb[0].mxu0 %v291_v38  ;;  %1200 = vmatmul.mubr.bf16.vlgmr.msra.gmra.mrb[0].mxu1 %v291_v38  ;;  %v2029_v32 = vld [vmem:[#allocation5 + $0x3a8] ss:$16 sps:$4 sm:$0xff]   ;;  %v2034_v33 = vld [vmem:[#allocation5 + $0x3c4] ss:$16 sps:$4 sm:$0xff]   ;;  %v2037_v34 = vld [vmem:[#allocation5 + $0x3cc] ss:$16 sps:$4 sm:$0xff]  }
  0xcc   :  { %1127 = vmatpush1.bf16.msra.mxu0 %v1948_v36  ;;  %1209 = vmatpush1.bf16.msra.mxu1 %v1951_v37  ;;  %v2032_v35 = vld [vmem:[#allocation5 + $0x3c0] ss:$16 sps:$4 sm:$0xff]   ;;  %v2035_v36 = vld [vmem:[#allocation5 + $0x3c8] ss:$16 sps:$4 sm:$0xff]   ;;  %v2040_v37 = vld [vmem:[#allocation5 + $0x3e4] ss:$16 sps:$4 sm:$0xff]  }
  0xcd   :  { %1158 = vmatprep.mubr.bf16.mxu0 %v294_v41  ;;  %1240 = vmatprep.mubr.bf16.mxu1 %v294_v41  ;;  %v2043_v38 = vld [vmem:[#allocation5 + $0x3ec] ss:$16 sps:$4 sm:$0xff]   ;;  %v289_v41 = vmax.f32 %v2300_v27, 0.0  ;;  %v2052_v27 = vld [vmem:[#allocation7 + $0x50] sm:$0xff]  }
  0xce   :  { %1128 = vmatprep.subr.bf16.mxu0 %v1956_v39  ;;  %1210 = vmatprep.subr.bf16.mxu1 %v1959_v40  ;;  %v2038_v39 = vld [vmem:[#allocation5 + $0x3e0] ss:$16 sps:$4 sm:$0xff]   ;;  %v2041_v40 = vld [vmem:[#allocation5 + $0x3e8] ss:$16 sps:$4 sm:$0xff]  }
  0xd0   :  { %1129 = vmatpush1.bf16.msra.mxu0 %v1954_v42  ;;  %1211 = vmatpush1.bf16.msra.mxu1 %v1957_v43  ;;  %v2044_v42 = vld [vmem:[#allocation7 + $0x40] sm:$0xff]  }
  0xd1   :  { %1130 = vmatprep.subr.bf16.mxu0 %v1962_v44  ;;  %1212 = vmatprep.subr.bf16.mxu1 %v1965_v45  ;;  %v2045_v43 = vld [vmem:[#allocation7 + $0xc0] sm:$0xff]  }
  0xd2   :  { %v2046_v44 = vld [vmem:[#allocation7] sm:$0xff]  }
  0xd3   :  { %v2047_v45 = vld [vmem:[#allocation7 + $0x80] sm:$0xff]  }
  0xd4   :  { %1131 = vmatpush1.bf16.msra.mxu0 %v1960_v46  ;;  %1213 = vmatpush1.bf16.msra.mxu1 %v1963_v47  ;;  %v293_v46 = vpack.c.bf16 %v289_v41, %v289_v41  ;;  %v2048_v47 = vld [vmem:[#allocation7 + $0x48] sm:$0xff]  }
  0xd5   :  { %1132 = vmatprep.subr.bf16.mxu0 %v1968_v48  ;;  %1214 = vmatprep.subr.bf16.mxu1 %v1971_v49  ;;  %v2049_v48 = vld [vmem:[#allocation7 + $0xc8] sm:$0xff]  }
  0xd6   :  { %v2050_v49 = vld [vmem:[#allocation7 + $0x8] sm:$0xff]  }
  0xd8   :  { %1133 = vmatpush1.bf16.msra.mxu0 %v1966_v50  ;;  %1215 = vmatpush1.bf16.msra.mxu1 %v1969_v51  ;;  %v2051_v50 = vld [vmem:[#allocation7 + $0x88] sm:$0xff]   ;;  %v2053_v51 = vld [vmem:[#allocation7 + $0xd0] sm:$0xff]  }
  0xd9   :  { %1134 = vmatprep.subr.bf16.mxu0 %v1974_v52  ;;  %1216 = vmatprep.subr.bf16.mxu1 %v1977_v53  ;;  %v2054_v52 = vld [vmem:[#allocation7 + $0x10] sm:$0xff]  }
  0xda   :  { %v2055_v53 = vld [vmem:[#allocation7 + $0x90] sm:$0xff]  }
  0xdc   :  { %1135 = vmatpush1.bf16.msra.mxu0 %v1972_v54  ;;  %1217 = vmatpush1.bf16.msra.mxu1 %v1975_v55  ;;  %v2056_v54 = vld [vmem:[#allocation7 + $0x58] sm:$0xff]  }
  0xdd   :  { %1136 = vmatprep.subr.bf16.mxu0 %v1980_v56  ;;  %1218 = vmatprep.subr.bf16.mxu1 %v1983_v57  ;;  %v2057_v55 = vld [vmem:[#allocation7 + $0xd8] sm:$0xff]  }
  0xde   :  { %v2058_v56 = vld [vmem:[#allocation7 + $0x18] sm:$0xff]  }
  0xdf   :  { %v2059_v57 = vld [vmem:[#allocation7 + $0x98] sm:$0xff]  }
  0xe0   :  { %1137 = vmatpush1.bf16.msra.mxu0 %v1978_v58  ;;  %1219 = vmatpush1.bf16.msra.mxu1 %v1981_v59  ;;  %v2060_v58 = vld [vmem:[#allocation7 + $0x60] sm:$0xff]  }
  0xe1   :  { %1138 = vmatprep.subr.bf16.mxu0 %v1986_v60  ;;  %1220 = vmatprep.subr.bf16.mxu1 %v1989_v61  ;;  %v2061_v59 = vld [vmem:[#allocation7 + $0xe0] sm:$0xff]  }
  0xe2   :  { %v2062_v60 = vld [vmem:[#allocation7 + $0x20] sm:$0xff]  }
  0xe3   :  { %v2063_v61 = vld [vmem:[#allocation7 + $0xa0] sm:$0xff]  }
  0xe4   :  { %1139 = vmatpush1.bf16.msra.mxu0 %v1984_v62  ;;  %1221 = vmatpush1.bf16.msra.mxu1 %v1987_v63  ;;  %v2064_v62 = vld [vmem:[#allocation7 + $0x68] sm:$0xff]  }
  0xe5   :  { %1140 = vmatprep.subr.bf16.mxu0 %v1992_v0  ;;  %1222 = vmatprep.subr.bf16.mxu1 %v1995_v1  ;;  %v2065_v63 = vld [vmem:[#allocation7 + $0xe8] sm:$0xff]  }
  0xe6   :  { %v2066_v0 = vld [vmem:[#allocation7 + $0x28] sm:$0xff]  }
  0xe7   :  { %v2067_v1 = vld [vmem:[#allocation7 + $0xa8] sm:$0xff]  }
  0xe8   :  { %1141 = vmatpush1.bf16.msra.mxu0 %v1990_v2  ;;  %1223 = vmatpush1.bf16.msra.mxu1 %v1993_v3  ;;  %v2068_v2 = vld [vmem:[#allocation7 + $0x70] sm:$0xff]  }
  0xe9   :  { %1142 = vmatprep.subr.bf16.mxu0 %v1998_v4  ;;  %1224 = vmatprep.subr.bf16.mxu1 %v2001_v5  ;;  %v2069_v3 = vld [vmem:[#allocation7 + $0xf0] sm:$0xff]  }
  0xea   :  { %v2070_v4 = vld [vmem:[#allocation7 + $0x30] sm:$0xff]  }
  0xeb   :  { %v2071_v5 = vld [vmem:[#allocation7 + $0xb0] sm:$0xff]  }
  0xec   :  { %1143 = vmatpush1.bf16.msra.mxu0 %v1996_v6  ;;  %1225 = vmatpush1.bf16.msra.mxu1 %v1999_v7  ;;  %v2072_v6 = vld [vmem:[#allocation7 + $0x78] sm:$0xff]  }
  0xed   :  { %1144 = vmatprep.subr.bf16.mxu0 %v2004_v8  ;;  %1226 = vmatprep.subr.bf16.mxu1 %v2007_v10  ;;  %v2073_v7 = vld [vmem:[#allocation7 + $0xf8] sm:$0xff]  }
  0xee   :  { %v2074_v8 = vld [vmem:[#allocation7 + $0x38] sm:$0xff]  }
  0xef   :  { %v2075_v10 = vld [vmem:[#allocation7 + $0xb8] sm:$0xff]  }
  0xf0   :  { %1145 = vmatpush1.bf16.msra.mxu0 %v2002_v11  ;;  %1227 = vmatpush1.bf16.msra.mxu1 %v2005_v12  ;;  %v423_v11 = vld [vmem:[%s2329_s4] sm:$0xf] }
  0xf1   :  { %1146 = vmatprep.subr.bf16.mxu0 %v2010_v14  ;;  %1228 = vmatprep.subr.bf16.mxu1 %v2013_v15  ;;  %v428_v12 = vrot.slane %v423_v11, %v2261_v9  ;;  %v436_v14 = vrot.slane %v423_v11, %v2263_v13  ;;  %v432_v15 = vrot.slane %v423_v11, %v2267_v19 }
  0xf4   :  { %1147 = vmatpush1.bf16.msra.mxu0 %v2008_v16  ;;  %1229 = vmatpush1.bf16.msra.mxu1 %v2011_v17  ;;  %v440_v16 = vrot.slane %v423_v11, %v2276_v28 }
  0xf5   :  { %1148 = vmatprep.subr.bf16.mxu0 %v2016_v18  ;;  %1230 = vmatprep.subr.bf16.mxu1 %v2019_v20 }
  0xf8   :  { %1149 = vmatpush1.bf16.msra.mxu0 %v2014_v21  ;;  %1231 = vmatpush1.bf16.msra.mxu1 %v2017_v22 }
  0xf9   :  { %1150 = vmatprep.subr.bf16.mxu0 %v2022_v23  ;;  %1232 = vmatprep.subr.bf16.mxu1 %v2025_v24 }
  0xfc   :  { %1151 = vmatpush1.bf16.msra.mxu0 %v2020_v25  ;;  %1233 = vmatpush1.bf16.msra.mxu1 %v2023_v26 }
  0xfd   :  { %1152 = vmatprep.subr.bf16.mxu0 %v2028_v29  ;;  %1234 = vmatprep.subr.bf16.mxu1 %v2031_v30 }
 0x100   :  { %1153 = vmatpush1.bf16.msra.mxu0 %v2026_v31  ;;  %1235 = vmatpush1.bf16.msra.mxu1 %v2029_v32 }
 0x101   :  { %1154 = vmatprep.subr.bf16.mxu0 %v2034_v33  ;;  %1236 = vmatprep.subr.bf16.mxu1 %v2037_v34 }
 0x104   :  { %1155 = vmatpush1.bf16.msra.mxu0 %v2032_v35  ;;  %1237 = vmatpush1.bf16.msra.mxu1 %v2035_v36 }
 0x105   :  { %1156 = vmatprep.subr.bf16.mxu0 %v2040_v37  ;;  %1238 = vmatprep.subr.bf16.mxu1 %v2043_v38  ;;  %v1746_v38 = vld [vmem:[%s2331_s6] ss:$0 sm:$0xff] }
 0x108   :  { %1157 = vmatpush1.bf16.msra.mxu0 %v2038_v39  ;;  %1239 = vmatpush1.bf16.msra.mxu1 %v2041_v40 }
 0x109   :  { %1779 = vmatprep.subr.bf16.mxu0 %v2044_v42  ;;  %1801 = vmatprep.subr.bf16.mxu1 %v2045_v43 }
 0x10b   :  { %1159 = vmatmul.mubr.bf16.vlgmr.msra.gmra.mrb[0].mxu0 %v293_v46  ;;  %1241 = vmatmul.mubr.bf16.vlgmr.msra.gmra.mrb[0].mxu1 %v293_v46 }
 0x10c   :  { %1780 = vmatpush3.bf16.msra.mxu0 %v2046_v44  ;;  %1802 = vmatpush3.bf16.msra.mxu1 %v2047_v45 }
 0x10d   :  { %1781 = vmatprep.subr.bf16.mxu0 %v2048_v47  ;;  %1803 = vmatprep.subr.bf16.mxu1 %v2049_v48 }
 0x110   :  { %1782 = vmatpush3.bf16.msra.mxu0 %v2050_v49  ;;  %1804 = vmatpush3.bf16.msra.mxu1 %v2051_v50 }
 0x111   :  { %1783 = vmatprep.subr.bf16.mxu0 %v2052_v27  ;;  %1805 = vmatprep.subr.bf16.mxu1 %v2053_v51 }
 0x114   :  { %1784 = vmatpush3.bf16.msra.mxu0 %v2054_v52  ;;  %1806 = vmatpush3.bf16.msra.mxu1 %v2055_v53 }
 0x115   :  { %1785 = vmatprep.subr.bf16.mxu0 %v2056_v54  ;;  %1807 = vmatprep.subr.bf16.mxu1 %v2057_v55 }
 0x118   :  { %1786 = vmatpush3.bf16.msra.mxu0 %v2058_v56  ;;  %1808 = vmatpush3.bf16.msra.mxu1 %v2059_v57 }
 0x119   :  { %1787 = vmatprep.subr.bf16.mxu0 %v2060_v58  ;;  %1809 = vmatprep.subr.bf16.mxu1 %v2061_v59 }
 0x11c   :  { %1788 = vmatpush3.bf16.msra.mxu0 %v2062_v60  ;;  %1810 = vmatpush3.bf16.msra.mxu1 %v2063_v61 }
 0x11d   :  { %1789 = vmatprep.subr.bf16.mxu0 %v2064_v62  ;;  %1811 = vmatprep.subr.bf16.mxu1 %v2065_v63 }
 0x120   :  { %1790 = vmatpush3.bf16.msra.mxu0 %v2066_v0  ;;  %1812 = vmatpush3.bf16.msra.mxu1 %v2067_v1 }
 0x121   :  { %1791 = vmatprep.subr.bf16.mxu0 %v2068_v2  ;;  %1813 = vmatprep.subr.bf16.mxu1 %v2069_v3 }
 0x124   :  { %1792 = vmatpush3.bf16.msra.mxu0 %v2070_v4  ;;  %1814 = vmatpush3.bf16.msra.mxu1 %v2071_v5 }
 0x125   :  { %1793 = vmatprep.subr.bf16.mxu0 %v2072_v6  ;;  %1815 = vmatprep.subr.bf16.mxu1 %v2073_v7 }
 0x128   :  { %1794 = vmatpush3.bf16.msra.mxu0 %v2074_v8  ;;  %1816 = vmatpush3.bf16.msra.mxu1 %v2075_v10 }
 0x1de   :  { %v1160_v17 = vpop.f32.mrb[0].mxu0  ;;  %v1242_v18 = vpop.f32.mrb[0].mxu1 }
 0x1df   :  { %v1823_v20 = vadd.f32 %v1160_v17, %v428_v12  ;;  %v1825_v21 = vadd.f32 %v1242_v18, %v436_v14  ;;  %v1162_v22 = vpop.f32.mrb[1].mxu0  ;;  %v1244_v23 = vpop.f32.mrb[1].mxu1 }
 0x1e0   :  { %v1824_v24 = vadd.f32 %v1162_v22, %v432_v15  ;;  %v1826_v25 = vadd.f32 %v1244_v23, %v440_v16  ;;  %v1164_v26 = vpop.f32.mrb[2].mxu0  ;;  %v1246_v29 = vpop.f32.mrb[2].mxu1 }
 0x1e1   :  { %v1249_v30 = vmax.f32 %v1823_v20, 0.0  ;;  %v1251_v31 = vmax.f32 %v1825_v21, 0.0  ;;  %v1165_v32 = vpop.f32.mrb[3].mxu0  ;;  %v1247_v9 = vpop.f32.mrb[3].mxu1 }
 0x1e2   :  { %v1250_v33 = vmax.f32 %v1824_v24, 0.0  ;;  %v1252_v13 = vmax.f32 %v1826_v25, 0.0 }
 0x1e3   :  { %v1253_v35 = vpack.c.bf16 %v1249_v30, %v1249_v30  ;;  %v1255_v28 = vpack.c.bf16 %v1251_v31, %v1251_v31 }
 0x1e4   :  { %v1254_v34 = vpack.c.bf16 %v1250_v33, %v1250_v33  ;;  %v1256_v19 = vpack.c.bf16 %v1252_v13, %v1252_v13 }
 0x1e6   :  { %1552 = vmatprep.mubr.bf16.mxu0 %v1254_v34  ;;  %1592 = vmatprep.mubr.bf16.mxu1 %v1256_v19 }
 0x1e7   :  { %1553 = vmatmul.mubr.bf16.vlgmr.msra.gmra.mrb[4].mxu0 %v1253_v35  ;;  %1593 = vmatmul.mubr.bf16.vlgmr.msra.gmra.mrb[4].mxu1 %v1255_v28 }
 0x2ba   :  { %v1795_v36 = vpop.f32.mrb[4].mxu0  ;;  %v1817_v37 = vpop.f32.mrb[4].mxu1 }
 0x2bb   :  { %v1796_v39 = vpop.f32.mrb[5].mxu0  ;;  %v1818_v40 = vpop.f32.mrb[5].mxu1 }
 0x2bc   :  { %v1797_v41 = vadd.f32 %v1796_v39, %v1795_v36  ;;  %v1819_v42 = vadd.f32 %v1818_v40, %v1817_v37  ;;  %v1798_v43 = vpop.f32.mrb[6].mxu0  ;;  %v1820_v44 = vpop.f32.mrb[6].mxu1 }
 0x2bd   :  { %v1799_v45 = vpop.f32.mrb[7].mxu0  ;;  %v1821_v46 = vpop.f32.mrb[7].mxu1 }
 0x2be   :  { %v1555_v47 = vadd.f32 %v1797_v41, %v1746_v38 }
 0x2c0   :  { %v1595_v48 = vadd.f32 %v1819_v42, %v1555_v47 }
 0x2c2   :  { %v1600_v49 = vpack.c.bf16 %v1595_v48, %v1595_v48 }
 0x2c4   :  { %1601 = vst [vmem:[#allocation8] sm:$0xf] %v1600_v49 }
 0x2c5   :  { %2153 = shalt.err (!%p2150_p0)
}
 0x2c6   :  { %s2154_s24 = scalar_lea.hbm %s2332_s7, 64 }
 0x2c7   :  { %p2155_p1 = scmp.ne.s32.totalorder %s2332_s7, %s2154_s24  ;;  %p2158_p2 = scmp.lt.u32.totalorder %s2154_s24, %s2332_s7 }
 0x2c9   :  { %p2160_p3 = pnand %p2158_p2, %p2155_p1 }
 0x2cb   :  { %2163 = shalt.err (!%p2160_p3)
}
 0x2cc   :  { %1611 = dma.vmem_to_hbm [thread:$0]  %s1609_s21, 64, %s2332_s7, [#allocation4]  }
 0x2cd   :  { %2168 = dma.done.wait [#allocation4], 64  }
 0x2ce   :  { %2169 = vsyncadd [#allocation4], 4294967232 }
 0x2cf   :  { %1615 = vsyncpa [#allocation3], 1 }
 0x2d0   :  { %1616 = vsyncpa [#allocation6], 1 }
 0x2d1   :  { %1617 = vsyncpa [#allocation4], 1 }

</bundles_post_ra>
